<compile_context>
chip_gen: v7x
topology: tpu7x:2x2x1
jax: 0.10.0
libtpu: 0.0.40
codegen_flags: <defaults>
</compile_context>

<pallas_src>
import math
import functools

import jax
import jax.numpy as jnp
from jax import lax
from jax.experimental import pallas as pl
from jax.experimental.pallas import tpu as pltpu


def _fused_attn_kernel(q_ref, k_ref, v_ref,
                       wq_ref, bq_ref, wk_ref, bk_ref, wv_ref, bv_ref,
                       wo_ref, bo_ref,
                       out_ref, *, num_heads, head_dim, scale):
    compute_dtype = wq_ref.dtype

    qf = q_ref[0]            # (Nq, E)
    kf = k_ref[0]            # (Nk, E)
    vf = v_ref[0]            # (Nk, E)

    # Fused head projections: one wide, lane-dense matmul per q/k/v (bias in f32).
    qh_all = jnp.dot(qf, wq_ref[...], preferred_element_type=jnp.float32) + bq_ref[...]
    kh_all = jnp.dot(kf, wk_ref[...], preferred_element_type=jnp.float32) + bk_ref[...]
    vh_all = jnp.dot(vf, wv_ref[...], preferred_element_type=jnp.float32) + bv_ref[...]

    # Cast MXU inputs (no-op when compute_dtype == f32).
    qc = qh_all.astype(compute_dtype)    # (Nq, H*Dh)
    kc = kh_all.astype(compute_dtype)    # (Nk, H*Dh)
    vc = vh_all.astype(compute_dtype)    # (Nk, H*Dh)

    head_outs = []
    for h in range(num_heads):
        lo = h * head_dim
        hi = lo + head_dim
        qh = qc[:, lo:hi]                # (Nq, Dh)
        kh = kc[:, lo:hi]                # (Nk, Dh)
        vh = vc[:, lo:hi]                # (Nk, Dh)

        # Contract over Dh of both operands (avoids materializing kh.T).
        s = lax.dot_general(qh, kh, (((1,), (1,)), ((), ())),
                            preferred_element_type=jnp.float32) * scale   # (Nq, Nk)
        s = s - jnp.max(s, axis=-1, keepdims=True)
        p = jnp.exp(s)
        p = p * pl.reciprocal(jnp.sum(p, axis=-1, keepdims=True), approx=True)

        head_outs.append(
            jnp.dot(p.astype(compute_dtype), vh,
                    preferred_element_type=jnp.float32))                  # (Nq, Dh)

    attn_out = jnp.concatenate(head_outs, axis=-1)                        # (Nq, H*Dh)

    # Single fused output projection (out_proj), bias in f32.
    out = jnp.dot(attn_out.astype(compute_dtype), wo_ref[...],
                  preferred_element_type=jnp.float32) + bo_ref[...]       # (Nq, Eo)
    out_ref[0] = out.astype(out_ref.dtype)


def split_head_sam_decoder_attention(q, k, v, params, *,
                                     compute_dtype=jnp.float32):
    """q: (B, Nq, E), k/v: (B, Nk, E). Returns (B, Nq, E_out) in float32."""
    B, Nq, E = q.shape
    _, Nk, _ = k.shape
    H, _, Dh = params["wq"].shape
    HD = H * Dh
    Eo = params["wo"].shape[-1]
    scale = 1.0 / math.sqrt(Dh)

    # Fuse per-head projection weights into lane-dense slabs.
    #   wq[h] maps E -> Dh; columns [h*Dh:(h+1)*Dh] of the fused (E, H*Dh) slab.
    wq_f = jnp.transpose(params["wq"], (1, 0, 2)).reshape(E, HD).astype(compute_dtype)
    wk_f = jnp.transpose(params["wk"], (1, 0, 2)).reshape(E, HD).astype(compute_dtype)
    wv_f = jnp.transpose(params["wv"], (1, 0, 2)).reshape(E, HD).astype(compute_dtype)
    bq_f = params["bq"].reshape(1, HD).astype(jnp.float32)
    bk_f = params["bk"].reshape(1, HD).astype(jnp.float32)
    bv_f = params["bv"].reshape(1, HD).astype(jnp.float32)
    # out_proj weight: (H, Dh, Eo) -> (H*Dh, Eo); rows [h*Dh+d] match attn_out columns.
    wo_f = params["wo"].reshape(HD, Eo).astype(compute_dtype)
    bo_f = params["bo"].reshape(1, Eo).astype(jnp.float32)

    kernel = functools.partial(_fused_attn_kernel,
                               num_heads=H, head_dim=Dh, scale=scale)

    batch_map = lambda b: (b, 0, 0)       # q/k/v/out: one batch element per grid step
    const_map = lambda b: (0, 0)          # weights/biases: resident, loaded once

    return pl.pallas_call(
        kernel,
        out_shape=jax.ShapeDtypeStruct((B, Nq, Eo), jnp.float32),
        grid_spec=pltpu.PrefetchScalarGridSpec(
            num_scalar_prefetch=0,
            grid=(B,),
            in_specs=[
                pl.BlockSpec((1, Nq, E), batch_map),   # q
                pl.BlockSpec((1, Nk, E), batch_map),   # k
                pl.BlockSpec((1, Nk, E), batch_map),   # v
                pl.BlockSpec((E, HD), const_map),      # wq (fused over heads)
                pl.BlockSpec((1, HD), const_map),      # bq
                pl.BlockSpec((E, HD), const_map),      # wk
                pl.BlockSpec((1, HD), const_map),      # bk
                pl.BlockSpec((E, HD), const_map),      # wv
                pl.BlockSpec((1, HD), const_map),      # bv
                pl.BlockSpec((HD, Eo), const_map),     # wo (out_proj weight)
                pl.BlockSpec((1, Eo), const_map),      # bo (out_proj bias)
            ],
            out_specs=pl.BlockSpec((1, Nq, Eo), batch_map),
        ),
        compiler_params=pltpu.CompilerParams(
            dimension_semantics=("parallel",)),
    )(q.astype(compute_dtype), k.astype(compute_dtype), v.astype(compute_dtype),
      wq_f, bq_f, wk_f, bk_f, wv_f, bv_f, wo_f, bo_f)


def reference(q, k, v, params):
    """Pure-JAX f32 reference mirroring the PyTorch module's per-head forward."""
    H, _, Dh = params["wq"].shape
    scale = 1.0 / math.sqrt(Dh)
    head_outs = []
    for h in range(H):
        qh = q @ params["wq"][h] + params["bq"][h]
        kh = k @ params["wk"][h] + params["bk"][h]
        vh = v @ params["wv"][h] + params["bv"][h]
        attn = (qh @ jnp.swapaxes(kh, -2, -1)) * scale
        attn = jax.nn.softmax(attn, axis=-1)
        head_outs.append(attn @ vh)
    cat = jnp.concatenate(head_outs, axis=-1)                    # (B, Nq, H*Dh)
    wo = params["wo"].reshape(H * Dh, params["wo"].shape[-1])
    return cat @ wo + params["bo"][0]


def _make_params(key, E, H, Dh, Eo, w_scale):
    ks = jax.random.split(key, 8)
    return {
        "wq": w_scale * jax.random.normal(ks[0], (H, E, Dh), jnp.float32),
        "bq": w_scale * jax.random.normal(ks[1], (H, 1, Dh), jnp.float32),
        "wk": w_scale * jax.random.normal(ks[2], (H, E, Dh), jnp.float32),
        "bk": w_scale * jax.random.normal(ks[3], (H, 1, Dh), jnp.float32),
        "wv": w_scale * jax.random.normal(ks[4], (H, E, Dh), jnp.float32),
        "bv": w_scale * jax.random.normal(ks[5], (H, 1, Dh), jnp.float32),
        "wo": w_scale * jax.random.normal(ks[6], (H, Dh, Eo), jnp.float32),
        "bo": w_scale * jax.random.normal(ks[7], (1, 1, Eo), jnp.float32),
    }


if __name__ == "__main__":
    key = jax.random.PRNGKey(0)
    k_small, k_big, kq, kk, kv = jax.random.split(key, 5)

    # --- small module-consistent config: embedding_dim=32, 4 heads, head_dim=8 ---
    B, Nq, Nk, E, H, Dh = 2, 8, 16, 32, 4, 8
    Eo = E
    params = _make_params(k_small, E, H, Dh, Eo, w_scale=0.1)
    q = jax.random.normal(kq, (B, Nq, E), jnp.float32)
    k = jax.random.normal(kk, (B, Nk, E), jnp.float32)
    v = jax.random.normal(kv, (B, Nk, E), jnp.float32)

    ref = reference(q, k, v, params)

    out_f32 = jax.block_until_ready(
        split_head_sam_decoder_attention(q, k, v, params,
                                         compute_dtype=jnp.float32))
    assert out_f32.shape == (B, Nq, Eo), out_f32.shape
    assert jnp.allclose(out_f32, ref, atol=2e-3, rtol=2e-3), \
        float(jnp.max(jnp.abs(out_f32 - ref)))

    # bf16 MXU-input path (softmax / accumulation still f32).
    out_bf16 = jax.block_until_ready(
        split_head_sam_decoder_attention(q, k, v, params,
                                         compute_dtype=jnp.bfloat16))
    assert jnp.allclose(out_bf16, ref, atol=5e-2, rtol=5e-2), \
        float(jnp.max(jnp.abs(out_bf16 - ref)))

    # --- realistic-width config (SAM decoder: embedding_dim=256, 8 heads, Dh=32) ---
    B2, Nq2, Nk2, E2, H2, Dh2 = 2, 8, 64, 256, 8, 32
    Eo2 = E2
    kp2, kq2, kk2, kv2 = jax.random.split(k_big, 4)
    params2 = _make_params(kp2, E2, H2, Dh2, Eo2, w_scale=0.05)
    q2 = jax.random.normal(kq2, (B2, Nq2, E2), jnp.float32)
    k2 = jax.random.normal(kk2, (B2, Nk2, E2), jnp.float32)
    v2 = jax.random.normal(kv2, (B2, Nk2, E2), jnp.float32)

    out2 = jax.block_until_ready(
        split_head_sam_decoder_attention(q2, k2, v2, params2,
                                         compute_dtype=jnp.float32))
    ref2 = reference(q2, k2, v2, params2)
    assert out2.shape == (B2, Nq2, Eo2), out2.shape
    assert jnp.allclose(out2, ref2, atol=5e-3, rtol=5e-3), \
        float(jnp.max(jnp.abs(out2 - ref2)))

    print("KERNEL_OK")
</pallas_src>

<mosaic_0001>
module attributes {stable_mosaic.version = 11 : i64} {
  func.func @_fused_attn_kernel(%arg0: i32, %arg1: memref<1x8x32xf32, #tpu.memory_space<vmem>>, %arg2: memref<1x16x32xf32, #tpu.memory_space<vmem>>, %arg3: memref<1x16x32xf32, #tpu.memory_space<vmem>>, %arg4: memref<32x32xf32, #tpu.memory_space<vmem>>, %arg5: memref<1x32xf32, #tpu.memory_space<vmem>>, %arg6: memref<32x32xf32, #tpu.memory_space<vmem>>, %arg7: memref<1x32xf32, #tpu.memory_space<vmem>>, %arg8: memref<32x32xf32, #tpu.memory_space<vmem>>, %arg9: memref<1x32xf32, #tpu.memory_space<vmem>>, %arg10: memref<32x32xf32, #tpu.memory_space<vmem>>, %arg11: memref<1x32xf32, #tpu.memory_space<vmem>>, %arg12: memref<1x8x32xf32, #tpu.memory_space<vmem>>) attributes {dimension_semantics = [#tpu.dimension_semantics<parallel>], iteration_bounds = array<i64: 2>, scalar_prefetch = 0 : i64, scratch_operands = 0 : i64, tpu.core_type = #tpu.core_type<tc>, window_params = [{transform_indices = @transform_0, window_bounds = array<i64: 1, 8, 32>}, {transform_indices = @transform_1, window_bounds = array<i64: 1, 16, 32>}, {transform_indices = @transform_2, window_bounds = array<i64: 1, 16, 32>}, {pipeline_mode = #tpu.pipeline_mode<synchronous>, transform_indices = @transform_3, window_bounds = array<i64: 32, 32>}, {pipeline_mode = #tpu.pipeline_mode<synchronous>, transform_indices = @transform_4, window_bounds = array<i64: 1, 32>}, {pipeline_mode = #tpu.pipeline_mode<synchronous>, transform_indices = @transform_5, window_bounds = array<i64: 32, 32>}, {pipeline_mode = #tpu.pipeline_mode<synchronous>, transform_indices = @transform_6, window_bounds = array<i64: 1, 32>}, {pipeline_mode = #tpu.pipeline_mode<synchronous>, transform_indices = @transform_7, window_bounds = array<i64: 32, 32>}, {pipeline_mode = #tpu.pipeline_mode<synchronous>, transform_indices = @transform_8, window_bounds = array<i64: 1, 32>}, {pipeline_mode = #tpu.pipeline_mode<synchronous>, transform_indices = @transform_9, window_bounds = array<i64: 32, 32>}, {pipeline_mode = #tpu.pipeline_mode<synchronous>, transform_indices = @transform_10, window_bounds = array<i64: 1, 32>}, {transform_indices = @transform_11, window_bounds = array<i64: 1, 8, 32>}]} {
    %c0 = arith.constant 0 : index
    %c0_0 = arith.constant 0 : index
    %c0_1 = arith.constant 0 : index
    %0 = vector.load %arg1[%c0, %c0_0, %c0_1] : memref<1x8x32xf32, #tpu.memory_space<vmem>>, vector<1x8x32xf32>
    %1 = vector.shape_cast %0 : vector<1x8x32xf32> to vector<8x32xf32>
    %c0_2 = arith.constant 0 : index
    %c0_3 = arith.constant 0 : index
    %c0_4 = arith.constant 0 : index
    %2 = vector.load %arg2[%c0_2, %c0_3, %c0_4] : memref<1x16x32xf32, #tpu.memory_space<vmem>>, vector<1x16x32xf32>
    %3 = vector.shape_cast %2 : vector<1x16x32xf32> to vector<16x32xf32>
    %c0_5 = arith.constant 0 : index
    %c0_6 = arith.constant 0 : index
    %c0_7 = arith.constant 0 : index
    %4 = vector.load %arg3[%c0_5, %c0_6, %c0_7] : memref<1x16x32xf32, #tpu.memory_space<vmem>>, vector<1x16x32xf32>
    %5 = vector.shape_cast %4 : vector<1x16x32xf32> to vector<16x32xf32>
    %c0_8 = arith.constant 0 : index
    %c0_9 = arith.constant 0 : index
    %6 = vector.load %arg4[%c0_8, %c0_9] : memref<32x32xf32, #tpu.memory_space<vmem>>, vector<32x32xf32>
    %cst = arith.constant dense<0.000000e+00> : vector<8x32xf32>
    %7 = tpu.matmul %1, %6, %cst {dimension_numbers = #tpu.dot_dimension_numbers<[1], [0], [0], [1], [0, 0, 1, 1], [], []>} : vector<8x32xf32>, vector<32x32xf32>, vector<8x32xf32> -> vector<8x32xf32>
    %c0_10 = arith.constant 0 : index
    %c0_11 = arith.constant 0 : index
    %8 = vector.load %arg5[%c0_10, %c0_11] : memref<1x32xf32, #tpu.memory_space<vmem>>, vector<1x32xf32>
    %9 = vector.broadcast %8 : vector<1x32xf32> to vector<8x32xf32>
    %10 = arith.addf %7, %9 : vector<8x32xf32>
    %c0_12 = arith.constant 0 : index
    %c0_13 = arith.constant 0 : index
    %11 = vector.load %arg6[%c0_12, %c0_13] : memref<32x32xf32, #tpu.memory_space<vmem>>, vector<32x32xf32>
    %cst_14 = arith.constant dense<0.000000e+00> : vector<16x32xf32>
    %12 = tpu.matmul %3, %11, %cst_14 {dimension_numbers = #tpu.dot_dimension_numbers<[1], [0], [0], [1], [0, 0, 1, 1], [], []>} : vector<16x32xf32>, vector<32x32xf32>, vector<16x32xf32> -> vector<16x32xf32>
    %c0_15 = arith.constant 0 : index
    %c0_16 = arith.constant 0 : index
    %13 = vector.load %arg7[%c0_15, %c0_16] : memref<1x32xf32, #tpu.memory_space<vmem>>, vector<1x32xf32>
    %14 = vector.broadcast %13 : vector<1x32xf32> to vector<16x32xf32>
    %15 = arith.addf %12, %14 : vector<16x32xf32>
    %c0_17 = arith.constant 0 : index
    %c0_18 = arith.constant 0 : index
    %16 = vector.load %arg8[%c0_17, %c0_18] : memref<32x32xf32, #tpu.memory_space<vmem>>, vector<32x32xf32>
    %cst_19 = arith.constant dense<0.000000e+00> : vector<16x32xf32>
    %17 = tpu.matmul %5, %16, %cst_19 {dimension_numbers = #tpu.dot_dimension_numbers<[1], [0], [0], [1], [0, 0, 1, 1], [], []>} : vector<16x32xf32>, vector<32x32xf32>, vector<16x32xf32> -> vector<16x32xf32>
    %c0_20 = arith.constant 0 : index
    %c0_21 = arith.constant 0 : index
    %18 = vector.load %arg9[%c0_20, %c0_21] : memref<1x32xf32, #tpu.memory_space<vmem>>, vector<1x32xf32>
    %19 = vector.broadcast %18 : vector<1x32xf32> to vector<16x32xf32>
    %20 = arith.addf %17, %19 : vector<16x32xf32>
    %21 = vector.extract_strided_slice %10 {offsets = [0, 0], sizes = [8, 8], strides = [1, 1]} : vector<8x32xf32> to vector<8x8xf32>
    %22 = vector.extract_strided_slice %15 {offsets = [0, 0], sizes = [16, 8], strides = [1, 1]} : vector<16x32xf32> to vector<16x8xf32>
    %23 = vector.extract_strided_slice %20 {offsets = [0, 0], sizes = [16, 8], strides = [1, 1]} : vector<16x32xf32> to vector<16x8xf32>
    %cst_22 = arith.constant dense<0.000000e+00> : vector<8x16xf32>
    %24 = tpu.matmul %21, %22, %cst_22 {dimension_numbers = #tpu.dot_dimension_numbers<[1], [1], [0], [0], [0, 0, 1, 0], [], []>} : vector<8x8xf32>, vector<16x8xf32>, vector<8x16xf32> -> vector<8x16xf32>
    %cst_23 = arith.constant 0.353553385 : f32
    %25 = vector.broadcast %cst_23 : f32 to vector<8x16xf32>
    %26 = arith.mulf %24, %25 : vector<8x16xf32>
    %cst_24 = arith.constant dense<0xFF800000> : vector<8xf32>
    %27 = vector.multi_reduction <maximumf>, %26, %cst_24 [1] : vector<8x16xf32> to vector<8xf32>
    %28 = vector.shape_cast %27 : vector<8xf32> to vector<8x1xf32>
    %29 = vector.broadcast %28 : vector<8x1xf32> to vector<8x16xf32>
    %30 = arith.subf %26, %29 : vector<8x16xf32>
    %31 = math.exp %30 : vector<8x16xf32>
    %cst_25 = arith.constant dense<0.000000e+00> : vector<8xf32>
    %32 = vector.multi_reduction <add>, %31, %cst_25 [1] : vector<8x16xf32> to vector<8xf32>
    %33 = vector.shape_cast %32 : vector<8xf32> to vector<8x1xf32>
    %34 = tpu.reciprocal %33 {approx = true} : vector<8x1xf32> -> vector<8x1xf32>
    %35 = vector.broadcast %34 : vector<8x1xf32> to vector<8x16xf32>
    %36 = arith.mulf %31, %35 : vector<8x16xf32>
    %cst_26 = arith.constant dense<0.000000e+00> : vector<8x8xf32>
    %37 = tpu.matmul %36, %23, %cst_26 {dimension_numbers = #tpu.dot_dimension_numbers<[1], [0], [0], [1], [0, 0, 1, 1], [], []>} : vector<8x16xf32>, vector<16x8xf32>, vector<8x8xf32> -> vector<8x8xf32>
    %38 = vector.extract_strided_slice %10 {offsets = [0, 8], sizes = [8, 8], strides = [1, 1]} : vector<8x32xf32> to vector<8x8xf32>
    %39 = vector.extract_strided_slice %15 {offsets = [0, 8], sizes = [16, 8], strides = [1, 1]} : vector<16x32xf32> to vector<16x8xf32>
    %40 = vector.extract_strided_slice %20 {offsets = [0, 8], sizes = [16, 8], strides = [1, 1]} : vector<16x32xf32> to vector<16x8xf32>
    %cst_27 = arith.constant dense<0.000000e+00> : vector<8x16xf32>
    %41 = tpu.matmul %38, %39, %cst_27 {dimension_numbers = #tpu.dot_dimension_numbers<[1], [1], [0], [0], [0, 0, 1, 0], [], []>} : vector<8x8xf32>, vector<16x8xf32>, vector<8x16xf32> -> vector<8x16xf32>
    %cst_28 = arith.constant 0.353553385 : f32
    %42 = vector.broadcast %cst_28 : f32 to vector<8x16xf32>
    %43 = arith.mulf %41, %42 : vector<8x16xf32>
    %cst_29 = arith.constant dense<0xFF800000> : vector<8xf32>
    %44 = vector.multi_reduction <maximumf>, %43, %cst_29 [1] : vector<8x16xf32> to vector<8xf32>
    %45 = vector.shape_cast %44 : vector<8xf32> to vector<8x1xf32>
    %46 = vector.broadcast %45 : vector<8x1xf32> to vector<8x16xf32>
    %47 = arith.subf %43, %46 : vector<8x16xf32>
    %48 = math.exp %47 : vector<8x16xf32>
    %cst_30 = arith.constant dense<0.000000e+00> : vector<8xf32>
    %49 = vector.multi_reduction <add>, %48, %cst_30 [1] : vector<8x16xf32> to vector<8xf32>
    %50 = vector.shape_cast %49 : vector<8xf32> to vector<8x1xf32>
    %51 = tpu.reciprocal %50 {approx = true} : vector<8x1xf32> -> vector<8x1xf32>
    %52 = vector.broadcast %51 : vector<8x1xf32> to vector<8x16xf32>
    %53 = arith.mulf %48, %52 : vector<8x16xf32>
    %cst_31 = arith.constant dense<0.000000e+00> : vector<8x8xf32>
    %54 = tpu.matmul %53, %40, %cst_31 {dimension_numbers = #tpu.dot_dimension_numbers<[1], [0], [0], [1], [0, 0, 1, 1], [], []>} : vector<8x16xf32>, vector<16x8xf32>, vector<8x8xf32> -> vector<8x8xf32>
    %55 = vector.extract_strided_slice %10 {offsets = [0, 16], sizes = [8, 8], strides = [1, 1]} : vector<8x32xf32> to vector<8x8xf32>
    %56 = vector.extract_strided_slice %15 {offsets = [0, 16], sizes = [16, 8], strides = [1, 1]} : vector<16x32xf32> to vector<16x8xf32>
    %57 = vector.extract_strided_slice %20 {offsets = [0, 16], sizes = [16, 8], strides = [1, 1]} : vector<16x32xf32> to vector<16x8xf32>
    %cst_32 = arith.constant dense<0.000000e+00> : vector<8x16xf32>
    %58 = tpu.matmul %55, %56, %cst_32 {dimension_numbers = #tpu.dot_dimension_numbers<[1], [1], [0], [0], [0, 0, 1, 0], [], []>} : vector<8x8xf32>, vector<16x8xf32>, vector<8x16xf32> -> vector<8x16xf32>
    %cst_33 = arith.constant 0.353553385 : f32
    %59 = vector.broadcast %cst_33 : f32 to vector<8x16xf32>
    %60 = arith.mulf %58, %59 : vector<8x16xf32>
    %cst_34 = arith.constant dense<0xFF800000> : vector<8xf32>
    %61 = vector.multi_reduction <maximumf>, %60, %cst_34 [1] : vector<8x16xf32> to vector<8xf32>
    %62 = vector.shape_cast %61 : vector<8xf32> to vector<8x1xf32>
    %63 = vector.broadcast %62 : vector<8x1xf32> to vector<8x16xf32>
    %64 = arith.subf %60, %63 : vector<8x16xf32>
    %65 = math.exp %64 : vector<8x16xf32>
    %cst_35 = arith.constant dense<0.000000e+00> : vector<8xf32>
    %66 = vector.multi_reduction <add>, %65, %cst_35 [1] : vector<8x16xf32> to vector<8xf32>
    %67 = vector.shape_cast %66 : vector<8xf32> to vector<8x1xf32>
    %68 = tpu.reciprocal %67 {approx = true} : vector<8x1xf32> -> vector<8x1xf32>
    %69 = vector.broadcast %68 : vector<8x1xf32> to vector<8x16xf32>
    %70 = arith.mulf %65, %69 : vector<8x16xf32>
    %cst_36 = arith.constant dense<0.000000e+00> : vector<8x8xf32>
    %71 = tpu.matmul %70, %57, %cst_36 {dimension_numbers = #tpu.dot_dimension_numbers<[1], [0], [0], [1], [0, 0, 1, 1], [], []>} : vector<8x16xf32>, vector<16x8xf32>, vector<8x8xf32> -> vector<8x8xf32>
    %72 = vector.extract_strided_slice %10 {offsets = [0, 24], sizes = [8, 8], strides = [1, 1]} : vector<8x32xf32> to vector<8x8xf32>
    %73 = vector.extract_strided_slice %15 {offsets = [0, 24], sizes = [16, 8], strides = [1, 1]} : vector<16x32xf32> to vector<16x8xf32>
    %74 = vector.extract_strided_slice %20 {offsets = [0, 24], sizes = [16, 8], strides = [1, 1]} : vector<16x32xf32> to vector<16x8xf32>
    %cst_37 = arith.constant dense<0.000000e+00> : vector<8x16xf32>
    %75 = tpu.matmul %72, %73, %cst_37 {dimension_numbers = #tpu.dot_dimension_numbers<[1], [1], [0], [0], [0, 0, 1, 0], [], []>} : vector<8x8xf32>, vector<16x8xf32>, vector<8x16xf32> -> vector<8x16xf32>
    %cst_38 = arith.constant 0.353553385 : f32
    %76 = vector.broadcast %cst_38 : f32 to vector<8x16xf32>
    %77 = arith.mulf %75, %76 : vector<8x16xf32>
    %cst_39 = arith.constant dense<0xFF800000> : vector<8xf32>
    %78 = vector.multi_reduction <maximumf>, %77, %cst_39 [1] : vector<8x16xf32> to vector<8xf32>
    %79 = vector.shape_cast %78 : vector<8xf32> to vector<8x1xf32>
    %80 = vector.broadcast %79 : vector<8x1xf32> to vector<8x16xf32>
    %81 = arith.subf %77, %80 : vector<8x16xf32>
    %82 = math.exp %81 : vector<8x16xf32>
    %cst_40 = arith.constant dense<0.000000e+00> : vector<8xf32>
    %83 = vector.multi_reduction <add>, %82, %cst_40 [1] : vector<8x16xf32> to vector<8xf32>
    %84 = vector.shape_cast %83 : vector<8xf32> to vector<8x1xf32>
    %85 = tpu.reciprocal %84 {approx = true} : vector<8x1xf32> -> vector<8x1xf32>
    %86 = vector.broadcast %85 : vector<8x1xf32> to vector<8x16xf32>
    %87 = arith.mulf %82, %86 : vector<8x16xf32>
    %cst_41 = arith.constant dense<0.000000e+00> : vector<8x8xf32>
    %88 = tpu.matmul %87, %74, %cst_41 {dimension_numbers = #tpu.dot_dimension_numbers<[1], [0], [0], [1], [0, 0, 1, 1], [], []>} : vector<8x16xf32>, vector<16x8xf32>, vector<8x8xf32> -> vector<8x8xf32>
    %89 = tpu.concatenate %37, %54, %71, %88 in 1 : vector<8x8xf32>, vector<8x8xf32>, vector<8x8xf32>, vector<8x8xf32> -> vector<8x32xf32>
    %c0_42 = arith.constant 0 : index
    %c0_43 = arith.constant 0 : index
    %90 = vector.load %arg10[%c0_42, %c0_43] : memref<32x32xf32, #tpu.memory_space<vmem>>, vector<32x32xf32>
    %cst_44 = arith.constant dense<0.000000e+00> : vector<8x32xf32>
    %91 = tpu.matmul %89, %90, %cst_44 {dimension_numbers = #tpu.dot_dimension_numbers<[1], [0], [0], [1], [0, 0, 1, 1], [], []>} : vector<8x32xf32>, vector<32x32xf32>, vector<8x32xf32> -> vector<8x32xf32>
    %c0_45 = arith.constant 0 : index
    %c0_46 = arith.constant 0 : index
    %92 = vector.load %arg11[%c0_45, %c0_46] : memref<1x32xf32, #tpu.memory_space<vmem>>, vector<1x32xf32>
    %93 = vector.broadcast %92 : vector<1x32xf32> to vector<8x32xf32>
    %94 = arith.addf %91, %93 : vector<8x32xf32>
    %c0_47 = arith.constant 0 : index
    %c0_48 = arith.constant 0 : index
    %c0_49 = arith.constant 0 : index
    %95 = vector.load %arg12[%c0_47, %c0_48, %c0_49] : memref<1x8x32xf32, #tpu.memory_space<vmem>>, vector<1x8x32xf32>
    %96 = vector.shape_cast %95 : vector<1x8x32xf32> to vector<8x32xf32>
    %97 = vector.shape_cast %94 : vector<8x32xf32> to vector<1x8x32xf32>
    tpu.vector_store %arg12[%c0_47, %c0_48, %c0_49], %97 {strides = array<i32>} : memref<1x8x32xf32, #tpu.memory_space<vmem>>, vector<1x8x32xf32>,
    return
  }
  func.func @transform_0(%arg0: i32) -> (i32, i32, i32) {
    %c0_i32 = arith.constant 0 : i32
    %c0_i32_0 = arith.constant 0 : i32
    %c0_i32_1 = arith.constant 0 : i32
    return %arg0, %c0_i32, %c0_i32_0 : i32, i32, i32
  }
  func.func @transform_1(%arg0: i32) -> (i32, i32, i32) {
    %c0_i32 = arith.constant 0 : i32
    %c0_i32_0 = arith.constant 0 : i32
    %c0_i32_1 = arith.constant 0 : i32
    return %arg0, %c0_i32, %c0_i32_0 : i32, i32, i32
  }
  func.func @transform_2(%arg0: i32) -> (i32, i32, i32) {
    %c0_i32 = arith.constant 0 : i32
    %c0_i32_0 = arith.constant 0 : i32
    %c0_i32_1 = arith.constant 0 : i32
    return %arg0, %c0_i32, %c0_i32_0 : i32, i32, i32
  }
  func.func @transform_3(%arg0: i32) -> (i32, i32) {
    %c0_i32 = arith.constant 0 : i32
    %c0_i32_0 = arith.constant 0 : i32
    %c0_i32_1 = arith.constant 0 : i32
    return %c0_i32, %c0_i32_0 : i32, i32
  }
  func.func @transform_4(%arg0: i32) -> (i32, i32) {
    %c0_i32 = arith.constant 0 : i32
    %c0_i32_0 = arith.constant 0 : i32
    %c0_i32_1 = arith.constant 0 : i32
    return %c0_i32, %c0_i32_0 : i32, i32
  }
  func.func @transform_5(%arg0: i32) -> (i32, i32) {
    %c0_i32 = arith.constant 0 : i32
    %c0_i32_0 = arith.constant 0 : i32
    %c0_i32_1 = arith.constant 0 : i32
    return %c0_i32, %c0_i32_0 : i32, i32
  }
  func.func @transform_6(%arg0: i32) -> (i32, i32) {
    %c0_i32 = arith.constant 0 : i32
    %c0_i32_0 = arith.constant 0 : i32
    %c0_i32_1 = arith.constant 0 : i32
    return %c0_i32, %c0_i32_0 : i32, i32
  }
  func.func @transform_7(%arg0: i32) -> (i32, i32) {
    %c0_i32 = arith.constant 0 : i32
    %c0_i32_0 = arith.constant 0 : i32
    %c0_i32_1 = arith.constant 0 : i32
    return %c0_i32, %c0_i32_0 : i32, i32
  }
  func.func @transform_8(%arg0: i32) -> (i32, i32) {
    %c0_i32 = arith.constant 0 : i32
    %c0_i32_0 = arith.constant 0 : i32
    %c0_i32_1 = arith.constant 0 : i32
    return %c0_i32, %c0_i32_0 : i32, i32
  }
  func.func @transform_9(%arg0: i32) -> (i32, i32) {
    %c0_i32 = arith.constant 0 : i32
    %c0_i32_0 = arith.constant 0 : i32
    %c0_i32_1 = arith.constant 0 : i32
    return %c0_i32, %c0_i32_0 : i32, i32
  }
  func.func @transform_10(%arg0: i32) -> (i32, i32) {
    %c0_i32 = arith.constant 0 : i32
    %c0_i32_0 = arith.constant 0 : i32
    %c0_i32_1 = arith.constant 0 : i32
    return %c0_i32, %c0_i32_0 : i32, i32
  }
  func.func @transform_11(%arg0: i32) -> (i32, i32, i32) {
    %c0_i32 = arith.constant 0 : i32
    %c0_i32_0 = arith.constant 0 : i32
    %c0_i32_1 = arith.constant 0 : i32
    return %arg0, %c0_i32, %c0_i32_0 : i32, i32, i32
  }
}

</mosaic_0001>

<bundles_post_ra>
// kernel: tpu_custom_call.1
= control target key start
LH: loop header
LB: loop body
LE: loop exit
PB: predicated region body
PF: predicated region fallthrough
CT: control target
= control target key end

     0   :  { %s3024_s0 = inlined_call_operand.hbm [shape: f32[2,8,32], index: 0, kind: input, shape index: {}]   ;;  %s3025_s1 = inlined_call_operand.hbm [shape: f32[2,16,32], index: 1, kind: input, shape index: {}]   ;;  %s3026_s2 = inlined_call_operand.hbm [shape: f32[2,16,32], index: 2, kind: input, shape index: {}]   ;;  %s3027_s3 = inlined_call_operand.hbm [shape: f32[32,32], index: 3, kind: input, shape index: {}]   ;;  %s3028_s4 = inlined_call_operand.vmem [shape: f32[1,32], index: 4, kind: input, shape index: {}]   ;;  %s3029_s5 = inlined_call_operand.hbm [shape: f32[32,32], index: 5, kind: input, shape index: {}]   ;;  %s3030_s6 = inlined_call_operand.vmem [shape: f32[1,32], index: 6, kind: input, shape index: {}]   ;;  %s3031_s7 = inlined_call_operand.hbm [shape: f32[32,32], index: 7, kind: input, shape index: {}]   ;;  %s3032_s8 = inlined_call_operand.hbm [shape: f32[1,32], index: 8, kind: input, shape index: {}]   ;;  %s3033_s9 = inlined_call_operand.vmem [shape: f32[32,32], index: 9, kind: input, shape index: {}]   ;;  %s3034_s10 = inlined_call_operand.vmem [shape: f32[1,32], index: 10, kind: input, shape index: {}]   ;;  %s3035_s11 = inlined_call_operand.hbm [shape: f32[2,8,32], index: 11, kind: output, shape index: {}]  }
   0x1   :  { %3062 = sst [smem:[#allocation26_spill]] %s3025_s1 }
   0x2   :  { %3063 = sst [smem:[#allocation27_spill]] %s3027_s3 }
   0x3   :  { %3064 = sst [smem:[#allocation28_spill]] %s3028_s4 }
   0x4   :  { %3065 = sst [smem:[#allocation29_spill]] %s3030_s6 }
   0x5   :  { %3066 = sst [smem:[#allocation30_spill]] %s3031_s7 }
   0x6   :  { %3067 = sst [smem:[#allocation31_spill]] %s3033_s9 }
   0x7   :  { %3068 = sst [smem:[#allocation32_spill]] %s3034_s10 }
   0x8   :  { %3069 = sst [smem:[#allocation33_spill]] %s3035_s11 }
   0x9   :  { %16 = vsyncpa [#allocation3], 0 }
   0xa   :  { %18 = vsyncpa [#allocation3 + $0x1], 0 }
   0xb   :  { %19 = vsyncpa [#allocation6], 0 }
   0xc   :  { %21 = vsyncpa [#allocation6 + $0x1], 0 }
   0xd   :  { %22 = vsyncpa [#allocation9], 0 }
   0xe   :  { %23 = vsyncpa [#allocation12], 0 }
   0xf   :  { %24 = vsyncpa [#allocation4], 0 }
  0x10   :  { %26 = vsyncpa [#allocation4 + $0x1], 0  ;;  %s2535_s17 = smov 0   ;;  %s2537_s18 = smov 0  }
  0x11   :  { %s2539_s19 = smov 0   ;;  %s2541_s20 = smov 0  }
  0x12 LB: > { %3070 = sst [smem:[#allocation20_spill]] %s2442_s17  ;;  %s2556_s21 = sadd.s32 4294967295, %s2454_s20   ;;  %s2454_s20 = sphi %s2541_s20, %s3114_s20   ;;  %s2450_s19 = sphi %s2539_s19, %s3116_s19   ;;  %s2446_s18 = sphi %s2537_s18, %s3118_s18   ;;  %s2442_s17 = sphi %s2535_s17, %s3117_s17  }
  0x13   : > { %3071 = sst [smem:[#allocation21_spill]] %s2450_s19  ;;  %s1762_s22 = sadd.s32 4294967294, %s2454_s20  }
  0x14   : > { %p52_p0 = scmp.ne.s32.totalorder %s2446_s18, %s2442_s17  ;;  %p3036_p1 = scmp.eq.s32.totalorder %s2556_s21, 0 }
  0x15   : > { %p302_p3 = scmp.eq.s32.totalorder %s1762_s22, 1  ;;  %p1763_p5 = scmp.ge.s32.totalorder %s2454_s20, 1 }
  0x16   : > { %p2565_p4 = por %p3036_p1, %p52_p0  ;;  %p309_p7 = scmp.lt.s32.totalorder %s2454_s20, 3 }
  0x17   : > { %p2570_p6 = por %p302_p3, %p52_p0  ;;  %s2456_s26 = smov [#allocation8]  }
  0x18   : > { %s3072_s23 = scalar_select %p2565_p4, 1, 0 }
  0x19   : > { %s3073_s24 = scalar_select %p2570_p6, 1, 0 }
  0x1a   : > { %p2575_p8 = pnand %p1763_p5, %p309_p7  ;;  %s321_s27 = sshll.u32 %s2456_s26, 4  ;;  %s2579_s27 = int_to_ptr.vmem [resolvable:$true] %s321_s27 }
  0x1b   : > { %3074 = sst [smem:[#allocation22_spill]] %s3073_s24  ;;  %s2457_s29 = smov [#allocation11]  }
  0x1c   : > { %s3075_s25 = scalar_select %p2575_p8, 1, 0 }
  0x1d   : > { %p2044_p9 = pneg %p2575_p8  ;;  %s353_s30 = sshll.u32 %s2457_s29, 4  ;;  %s2590_s30 = int_to_ptr.vmem [resolvable:$true] %s353_s30 }
  0x1e   : > { %s3077_s3 = sld [smem:[#allocation27_spill]] }
  0x1f   : > { %p2586_p11 = pnand %p2044_p9, %p3036_p1 }
  0x21   : > { %s3076_s28 = scalar_select %p2586_p11, 1, 0 }
  0x22   : > { %p2600_p13 = pneg %p2586_p11 }
  0x24   : > { %s2174_s14 = scalar_lea.hbm %s3077_s3, 512 }
  0x25   : > { %p2175_p12 = scmp.ne.s32.totalorder %s3077_s3, %s2174_s14  ;;  %p2181_p5 = scmp.lt.u32.totalorder %s2174_s14, %s3077_s3 }
  0x26   : > { %s3078_s22 = scalar_select %p2600_p13, 1, 0 }
  0x27   : > { %p2177_p0 = pnand %p2600_p13, %p2175_p12 }
  0x29   : > { %p2178_p3 = pneg %p2177_p0 }
  0x2b   : > { %p2183_p7 = pnand %p2181_p5, %p2178_p3 }
  0x2d   : > { %2186 = shalt.err (!%p2183_p7)
}
  0x2e   : > { %s2187_s12 = scalar_lea.vmem %s2579_s27, 512  ;;  %p2195_p2 = scmp.lt.s32.totalorder %s2579_s27, %s2579_s27 }
  0x2f   : > { %p2188_p9 = scmp.ne.s32.totalorder %s2579_s27, %s2187_s12  ;;  %p2196_p6 = scmp.lt.s32.totalorder %s2187_s12, %s2187_s12 }
  0x31   : > { %p2190_p10 = pnand %p2188_p9, %p2600_p13  ;;  %p2197_p12 = por %p2196_p6, %p2195_p2 }
  0x33   : > { %p2191_p1 = pneg %p2190_p10 }
  0x35   : > { %p2198_p0 = pnand %p2197_p12, %p2191_p1 }
  0x37   : > { %2201 = shalt.err (!%p2198_p0)
}
  0x38   : > { %s3040_s13 = smov 128   ;;  %s3042_s14 = smov 8  }
  0x39   : > { %2047 = dma.hbm_to_vmem [thread:$0]  (!%p2586_p11), %s3077_s3, 512, %s2579_s27, [#allocation9], %s3040_s13, %s3040_s13, %s3042_s14  }
  0x3a   : > { %s3079_s7 = sld [smem:[#allocation30_spill]] }
  0x40   : > { %s2202_s12 = scalar_lea.hbm %s3079_s7, 512 }
  0x41   : > { %p2203_p1 = scmp.ne.s32.totalorder %s3079_s7, %s2202_s12  ;;  %p2209_p10 = scmp.lt.u32.totalorder %s2202_s12, %s3079_s7 }
  0x43   : > { %p2205_p2 = pnand %p2203_p1, %p2600_p13 }
  0x45   : > { %p2206_p6 = pneg %p2205_p2 }
  0x47   : > { %p2211_p3 = pnand %p2209_p10, %p2206_p6 }
  0x49   : > { %2214 = shalt.err (!%p2211_p3)
}
  0x4a   : > { %s2215_s27 = scalar_lea.vmem %s2590_s30, 512  ;;  %p2223_p12 = scmp.lt.s32.totalorder %s2590_s30, %s2590_s30 }
  0x4b   : > { %p2216_p5 = scmp.ne.s32.totalorder %s2590_s30, %s2215_s27  ;;  %p2224_p0 = scmp.lt.s32.totalorder %s2215_s27, %s2215_s27 }
  0x4d   : > { %p2218_p7 = pnand %p2216_p5, %p2600_p13  ;;  %p2225_p1 = por %p2224_p0, %p2223_p12 }
  0x4f   : > { %p2219_p9 = pneg %p2218_p7 }
  0x51   : > { %p2226_p2 = pnand %p2225_p1, %p2219_p9 }
  0x53   : > { %2229 = shalt.err (!%p2226_p2)
}
  0x54   : > { %2053 = dma.hbm_to_vmem [thread:$0]  (!%p2586_p11), %s3079_s7, 512, %s2590_s30, [#allocation12], %s3040_s13, %s3040_s13, %s3042_s14  }
  0x55   : > { %s2651_s17 = sadd.s32 1, %s2454_s20   ;;  %s39_s24 = sadd.s32 1, %s2450_s19 }
  0x56   : > { %3080 = sst [smem:[#allocation23_spill]] %s2651_s17  ;;  %s36_s15 = ssub.s32 %s2454_s20, %s2651_s17 }
  0x57   : > { %p46_p6 = scmp.ne.s32.totalorder %s2450_s19, %s2446_s18  ;;  %p37_p10 = scmp.eq.s32.totalorder %s36_s15, 0 }
  0x58   : > { %p47_p3 = scmp.eq.s32.totalorder %s2454_s20, 0  ;;  %p3081_p5 = scmp.eq.s32.totalorder %s2556_s21, 1 }
  0x59   : > { %p2075_p9 = scmp.lt.s32.totalorder %s2454_s20, 2  ;;  %s2670_s29 = sand.u32 1, %s2450_s19  }
  0x5a   : > { %p2661_p7 = por %p3081_p5, %p46_p6  ;;  %p48_p12 = por %p47_p3, %p46_p6 }
  0x5b   : > { %s2667_s26 = scalar_select %p37_p10, %s2450_s19, %s39_s24  }
  0x5c   : > { %s3082_s16 = scalar_select %p2661_p7, 1, 0 }
  0x5d   : > { %3084 = sst [smem:[#allocation25_spill]] %s2667_s26  ;;  %s402_s30 = sand.u32 1, %s2454_s20  }
  0x5e   : > { %3083 = sst [smem:[#allocation24_spill]] %s3082_s16  ;;  %s3047_s12 = sshll.u32 %s2670_s29, 4 }
  0x5f   : > { %p2674_p0 = pnand %p2075_p9, %p48_p12  ;;  %s1816_s10 = sshll.u32 %s2454_s20, 8 }
  0x60   : > { %s3086_s1 = sld [smem:[#allocation26_spill]]  ;;  %s406_s24 = scalar_lea.vmem [#allocation5], %s3047_s12 }
  0x61   : > { %s3085_s27 = scalar_select %p2674_p0, 1, 0 }
  0x62   : > { %s413_s14 = sshll.u32 %s406_s24, 4  ;;  %s2691_s26 = scalar_lea.hbm %s3026_s2, %s1816_s10  ;;  %s2686_s14 = int_to_ptr.vmem [resolvable:$true] %s413_s14 }
  0x63   : > { %s2693_s19 = scalar_lea.sflag [#allocation6], %s402_s30  ;;  %p2699_p2 = pneg %p2674_p0 }
  0x65   : > { %s3087_s11 = scalar_select %p2699_p2, 1, 0 }
  0x66   : > { %s2682_s13 = scalar_lea.hbm %s3086_s1, %s1816_s10  ;;  %s2235_s12 = scalar_lea.hbm %s3086_s1, 512 }
  0x67   : > { %s2230_s17 = scalar_lea.hbm %s2682_s13, 256  ;;  %p2236_p3 = scmp.lt.u32.totalorder %s2682_s13, %s3086_s1 }
  0x68   : > { %p2231_p1 = scmp.ne.s32.totalorder %s2682_s13, %s2230_s17  ;;  %p2237_p5 = scmp.lt.u32.totalorder %s2235_s12, %s2230_s17 }
  0x69   : > { %p2239_p12 = scmp.lt.u32.totalorder %s2230_s17, %s2682_s13 }
  0x6a   : > { %p2233_p6 = pnand %p2699_p2, %p2231_p1  ;;  %p2238_p9 = por %p2237_p5, %p2236_p3 }
  0x6c   : > { %p2234_p10 = pneg %p2233_p6  ;;  %p2240_p7 = por %p2239_p12, %p2238_p9 }
  0x6e   : > { %p2241_p4 = pnand %p2240_p7, %p2234_p10 }
  0x70   : > { %2244 = shalt.err (!%p2241_p4)
}
  0x71   : > { %s2245_s30 = scalar_lea.vmem %s2686_s14, 256  ;;  %s2460_s10 = smov [#allocation5]  }
  0x72   : > { %p2246_p1 = scmp.ne.s32.totalorder %s2686_s14, %s2245_s30  ;;  %s2250_s15 = sshll.u32 %s2460_s10, 4  ;;  %s2251_s15 = int_to_ptr.vmem [resolvable:$false] %s2250_s15 }
  0x73   : > { %s2252_s24 = scalar_lea.vmem %s2251_s15, 512  ;;  %p2253_p11 = scmp.lt.s32.totalorder %s2686_s14, %s2251_s15 }
  0x74   : > { %p2248_p6 = pnand %p2246_p1, %p2699_p2  ;;  %p2254_p13 = scmp.lt.s32.totalorder %s2252_s24, %s2245_s30 }
  0x76   : > { %p2249_p8 = pneg %p2248_p6  ;;  %p2255_p3 = por %p2254_p13, %p2253_p11 }
  0x78   : > { %p2256_p5 = pnand %p2255_p3, %p2249_p8 }
  0x7a   : > { %2259 = shalt.err (!%p2256_p5)
}
  0x7b   : > { %s3088_s17 = smov 8   ;;  %s3089_s12 = smov 128  }
  0x7c   : > { %2063 = dma.hbm_to_vmem [thread:$0]  (!%p2674_p0), %s2682_s13, 256, %s2686_s14, %s2693_s19, %s3089_s12, %s3089_s12, %s3088_s17  }
  0x7d   : > { %s3090_s3 = sshll.u32 %s2670_s29, 4  ;;  %s2461_s30 = smov [#allocation10]  }
  0x7e   : > { %s427_s7 = scalar_lea.vmem [#allocation7], %s3090_s3  ;;  %s337_s15 = sshll.u32 %s2461_s30, 4  ;;  %s338_s15 = int_to_ptr.vmem [resolvable:$true] %s337_s15 }
  0x7f   : > { %s434_s10 = sshll.u32 %s427_s7, 4  ;;  %s2260_s16 = scalar_lea.hbm %s3029_s5, 512  ;;  %s2728_s10 = int_to_ptr.vmem [resolvable:$true] %s434_s10 }
  0x80   : > { %p2261_p4 = scmp.ne.s32.totalorder %s3029_s5, %s2260_s16  ;;  %p3091_p8 = scmp.ne.s32.totalorder %s3078_s22, 0 }
  0x81   : > { %p2267_p7 = scmp.lt.u32.totalorder %s2260_s16, %s3029_s5 }
  0x82   : > { %p2263_p11 = pnand %p2261_p4, %p3091_p8 }
  0x84   : > { %p2264_p13 = pneg %p2263_p11 }
  0x86   : > { %p2269_p10 = pnand %p2267_p7, %p2264_p13 }
  0x88   : > { %2272 = shalt.err (!%p2269_p10)
}
  0x89   : > { %s2273_s3 = scalar_lea.vmem %s338_s15, 512  ;;  %p2281_p6 = scmp.lt.s32.totalorder %s338_s15, %s338_s15 }
  0x8a   : > { %p2274_p9 = scmp.ne.s32.totalorder %s338_s15, %s2273_s3  ;;  %p2282_p3 = scmp.lt.s32.totalorder %s2273_s3, %s2273_s3 }
  0x8c   : > { %p2276_p12 = pnand %p2274_p9, %p3091_p8  ;;  %p2283_p5 = por %p2282_p3, %p2281_p6 }
  0x8e   : > { %p2277_p1 = pneg %p2276_p12 }
  0x90   : > { %p2284_p0 = pnand %p2283_p5, %p2277_p1 }
  0x92   : > { %2287 = shalt.err (!%p2284_p0)
}
  0x93   : > { %p3092_p4 = scmp.ne.s32.totalorder %s3076_s28, 0  ;;  %s2462_s9 = smov [#allocation13]  }
  0x94   : > { %s367_s16 = sshll.u32 %s2462_s9, 4  ;;  %s1769_s7 = sshll.u32 %s2670_s29, 3  ;;  %s368_s16 = int_to_ptr.vmem [resolvable:$true] %s367_s16 }
  0x95   : > { %2050 = dma.hbm_to_vmem [thread:$0]  (!%p3092_p4), %s3029_s5, 512, %s338_s15, [#allocation9], %s3089_s12, %s3089_s12, %s3088_s17  }
  0x96   : > { %s2288_s13 = scalar_lea.hbm %s3032_s8, 16 }
  0x97   : > { %p2289_p0 = scmp.ne.s32.totalorder %s3032_s8, %s2288_s13  ;;  %p2295_p7 = scmp.lt.u32.totalorder %s2288_s13, %s3032_s8 }
  0x99   : > { %p2291_p11 = pnand %p2289_p0, %p3091_p8 }
  0x9b   : > { %p2292_p13 = pneg %p2291_p11 }
  0x9d   : > { %p2297_p10 = pnand %p2295_p7, %p2292_p13 }
  0x9f   : > { %2300 = shalt.err (!%p2297_p10)
}
  0xa0   : > { %s2301_s15 = scalar_lea.vmem %s368_s16, 16  ;;  %s2308_s4 = scalar_lea.vmem %s368_s16, 32 }
  0xa1   : > { %p2302_p9 = scmp.ne.s32.totalorder %s368_s16, %s2301_s15  ;;  %p2309_p6 = scmp.lt.s32.totalorder %s368_s16, %s368_s16 }
  0xa2   : > { %p2310_p3 = scmp.lt.s32.totalorder %s2308_s4, %s2301_s15 }
  0xa3   : > { %p2304_p12 = pnand %p2302_p9, %p3091_p8 }
  0xa4   : > { %p2311_p5 = por %p2310_p3, %p2309_p6 }
  0xa5   : > { %p2305_p1 = pneg %p2304_p12 }
  0xa7   : > { %p2312_p2 = pnand %p2311_p5, %p2305_p1 }
  0xa9   : > { %2315 = shalt.err (!%p2312_p2)
}
  0xaa   : > { %2056 = dma.hbm_to_vmem [thread:$0]  (!%p3092_p4), %s3032_s8, 16, %s368_s16, [#allocation12]  }
  0xab   : > { %s1770_s6 = sshll.u32 %s2454_s20, 7  ;;  %s388_s14 = scalar_lea.vmem [#allocation2], %s1769_s7 }
  0xac   : > { %s2774_s13 = scalar_lea.hbm %s3024_s0, %s1770_s6  ;;  %s395_s3 = sshll.u32 %s388_s14, 4  ;;  %s396_s3 = int_to_ptr.vmem [resolvable:$true] %s395_s3 }
  0xad   : > { %s385_s28 = scalar_lea.sflag [#allocation3], %s2670_s29  ;;  %s2316_s1 = scalar_lea.hbm %s2774_s13, 128 }
  0xae   : > { %p2317_p2 = scmp.ne.s32.totalorder %s2774_s13, %s2316_s1  ;;  %p3093_p8 = scmp.ne.s32.totalorder %s3087_s11, 0 }
  0xaf   : > { %s2321_s4 = scalar_lea.hbm %s3024_s0, 256  ;;  %p2322_p4 = scmp.lt.u32.totalorder %s2774_s13, %s3024_s0 }
  0xb0   : > { %p2319_p0 = pnand %p2317_p2, %p3093_p8  ;;  %p2323_p13 = scmp.lt.u32.totalorder %s2321_s4, %s2316_s1 }
  0xb1   : > { %p2325_p10 = scmp.lt.u32.totalorder %s2316_s1, %s2774_s13 }
  0xb2   : > { %p2320_p11 = pneg %p2319_p0  ;;  %p2324_p7 = por %p2323_p13, %p2322_p4 }
  0xb4   : > { %p2326_p9 = por %p2325_p10, %p2324_p7 }
  0xb6   : > { %p2327_p12 = pnand %p2326_p9, %p2320_p11 }
  0xb8   : > { %2330 = shalt.err (!%p2327_p12)
}
  0xb9   : > { %s2331_s29 = scalar_lea.vmem %s396_s3, 128  ;;  %s2463_s7 = smov [#allocation2]  }
  0xba   : > { %p2332_p1 = scmp.ne.s32.totalorder %s396_s3, %s2331_s29  ;;  %s2336_s6 = sshll.u32 %s2463_s7, 4  ;;  %s2337_s6 = int_to_ptr.vmem [resolvable:$false] %s2336_s6 }
  0xbb   : > { %s2338_s24 = scalar_lea.vmem %s2337_s6, 256  ;;  %p2339_p5 = scmp.lt.s32.totalorder %s396_s3, %s2337_s6 }
  0xbc   : > { %p2334_p6 = pnand %p2332_p1, %p3093_p8  ;;  %p2340_p2 = scmp.lt.s32.totalorder %s2338_s24, %s2331_s29 }
  0xbe   : > { %p2335_p3 = pneg %p2334_p6  ;;  %p2341_p0 = por %p2340_p2, %p2339_p5 }
  0xc0   : > { %p2342_p4 = pnand %p2341_p0, %p2335_p3 }
  0xc2   : > { %2345 = shalt.err (!%p2342_p4)
}
  0xc3   : > { %p3094_p13 = scmp.ne.s32.totalorder %s3085_s27, 0  ;;  %s2346_s22 = scalar_lea.hbm %s2691_s26, 256 }
  0xc4   : > { %p2347_p11 = scmp.ne.s32.totalorder %s2691_s26, %s2346_s22  ;;  %s2351_s16 = scalar_lea.hbm %s3026_s2, 512 }
  0xc5   : > { %2060 = dma.hbm_to_vmem [thread:$0]  (!%p3094_p13), %s2774_s13, 128, %s396_s3, %s385_s28  }
  0xc6   : > { %p2349_p7 = pnand %p2347_p11, %p3093_p8  ;;  %p2352_p9 = scmp.lt.u32.totalorder %s2691_s26, %s3026_s2 }
  0xc7   : > { %p2353_p12 = scmp.lt.u32.totalorder %s2351_s16, %s2346_s22  ;;  %p2355_p6 = scmp.lt.u32.totalorder %s2346_s22, %s2691_s26 }
  0xc8   : > { %p2350_p10 = pneg %p2349_p7 }
  0xc9   : > { %p2354_p1 = por %p2353_p12, %p2352_p9 }
  0xcb   : > { %p2356_p3 = por %p2355_p6, %p2354_p1 }
  0xcd   : > { %p2357_p5 = pnand %p2356_p3, %p2350_p10 }
  0xcf   : > { %2360 = shalt.err (!%p2357_p5)
}
  0xd0   : > { %s2361_s13 = scalar_lea.vmem %s2728_s10, 256  ;;  %s2464_s3 = smov [#allocation7]  }
  0xd1   : > { %p2362_p2 = scmp.ne.s32.totalorder %s2728_s10, %s2361_s13  ;;  %s2366_s28 = sshll.u32 %s2464_s3, 4  ;;  %s2367_s28 = int_to_ptr.vmem [resolvable:$false] %s2366_s28 }
  0xd2   : > { %s2368_s9 = scalar_lea.vmem %s2367_s28, 512  ;;  %p2369_p11 = scmp.lt.s32.totalorder %s2728_s10, %s2367_s28 }
  0xd3   : > { %p2364_p0 = pnand %p2362_p2, %p3093_p8  ;;  %p2370_p7 = scmp.lt.s32.totalorder %s2368_s9, %s2361_s13 }
  0xd5   : > { %p2365_p4 = pneg %p2364_p0  ;;  %p2371_p9 = por %p2370_p7, %p2369_p11 }
  0xd7   : > { %p2372_p12 = pnand %p2371_p9, %p2365_p4 }
  0xd9   : > { %2375 = shalt.err (!%p2372_p12)
}
  0xda   : > { %2066 = dma.hbm_to_vmem [thread:$0]  (!%p3094_p13), %s2691_s26, 256, %s2728_s10, %s2693_s19, %s3089_s12, %s3089_s12, %s3088_s17  }
  0xdb   : > { %p3095_p8 = scmp.ne.s32.totalorder %s3075_s25, 0 }
  0xdc   : > { %s2822_s11 = sand.u32 (!%p3095_p8), 1, %s2446_s18   ;;  %p3096_p10 = scmp.ne.s32.totalorder (!%p3095_p8), %s3072_s23, 0 }
  0xdd   : > { %446 = sbr.rel (%p3095_p8) target bundleno = 3167 (0xc5f), region = 64  ;;  %s1778_s30 = sshll.u32 (!%p3095_p8), %s2822_s11, 3 }
  0xde   : > { %s449_s29 = scalar_lea.sflag (!%p3095_p8), [#allocation3], %s2822_s11  ;;  %s2828_s27 = scalar_lea.vmem (!%p3095_p8), [#allocation2], %s1778_s30 }
  0xe4   : > { %2421 = dma.done.wait (%p3096_p10), %s449_s29, 128  }
  0xe5   : > { %2423 = vsyncadd (%p3096_p10), %s449_s29, 4294967168  ;;  %s457_s19 = sand.u32 1, %s2556_s21   ;;  %s1779_s25 = sshll.u32 %s2822_s11, 4 }
  0xe6   : > { %s458_s26 = scalar_lea.sflag [#allocation6], %s457_s19  ;;  %s2836_s17 = scalar_lea.vmem [#allocation5], %s1779_s25 }
  0xe7   : > { %2425 = dma.done.wait (%p3096_p10), %s458_s26, 512  }
  0xe8   : > { %2427 = vsyncadd (%p3096_p10), %s458_s26, 4294966784  ;;  %s2842_s12 = scalar_lea.vmem [#allocation7], %s1779_s25  ;;  %p3097_p13 = scmp.eq.s32.totalorder %s2556_s21, 0 }
  0xea   : > { %2429 = dma.done.wait (%p3097_p13), [#allocation9], 1024   ;;  %p3098_p1 = pmov %p3097_p13 }
  0xec   : > { %2431 = vsyncadd (%p3098_p1), [#allocation9], 4294966272  ;;  %p3099_p6 = pmov %p3098_p1 }
  0xed   : > { %p3100_p3 = pmov %p3098_p1 }
  0xee   : > { %2433 = dma.done.wait (%p3099_p6), [#allocation12], 528  }
  0xef   : > { %2435 = vsyncadd (%p3100_p3), [#allocation12], 4294966768  ;;  %v2465_v0 = vmov 0.0|0.0   ;;  %vm2466_vm0 = vmmov 0   ;;  %v2467_v1 = vmov 0.0   ;;  %vm551_vm1 = vcmask 261120  }
  0xf0   : > { %1964 = vmatprep.subr.bf16.mxu0 %v2465_v0  ;;  %1872 = vmatprep.mubr.msk.f32.mxu0 %vm2466_vm0, %v2467_v1  ;;  %v625_v2 = vld [vmem:[#allocation10] sm:$0xff]  ;;  %v626_v3 = vld [vmem:[#allocation10 + $0x8] sm:$0xff]  ;;  %v627_v4 = vld [vmem:[#allocation10 + $0x10] sm:$0xff]  ;;  %s3101_s7 = sld [smem:[#allocation29_spill]]  ;;  %vm809_vm2 = vcmask 64512   ;;  %s3104_s22 = sld [smem:[#allocation28_spill]] }
  0xf1   : > { %v1970_v5 = vpack.c.bf16 %v626_v3, %v625_v2  ;;  %v628_v6 = vld [vmem:[#allocation10 + $0x18] sm:$0xff]  ;;  %v536_v7 = vld [vmem:[%s2836_s17] sm:$0xff]  ;;  %v541_v10 = vld [vmem:[#allocation8 + $0x8] sm:$0xff]  ;;  %s2468_s14 = smov 120   ;;  %vm890_vm4 = vcmask 130048   ;;  %s2469_s1 = smov 112  }
  0xf2   : > { %v1974_v8 = vpack.c.bf16 %v628_v6, %v627_v4  ;;  %1883 = vmatprep.mubr.msk.f32.mxu1 %vm551_vm1, %v536_v7  ;;  %v540_v9 = vld [vmem:[#allocation8] sm:$0xff]  ;;  %v542_v11 = vld [vmem:[#allocation8 + $0x10] sm:$0xff]  ;;  %v543_v13 = vld [vmem:[#allocation8 + $0x18] sm:$0xff]  ;;  %s2470_s16 = smov 104   ;;  %s2471_s15 = smov 8   ;;  %vm1510_vm5 = vcmask 195584  }
  0xf3   : > { %1971 = vmatprep.subr.bf16.mxu1 %v1970_v5  ;;  %v1965_v12 = vpack.c.bf16 %v541_v10, %v540_v9  ;;  %v1968_v14 = vpack.c.bf16 %v543_v13, %v542_v11  ;;  %v537_v15 = vld [vmem:[%s2836_s17 + $0x8] sm:$0xff]  ;;  %vm2870_vm3 = vmpackc.low %vm809_vm2, %vm809_vm2  ;;  %v717_v29 = vld [vmem:[#allocation11] sm:$0xff]  ;;  %s2472_s4 = smov 16   ;;  %s3105_s28 = sld [smem:[#allocation31_spill]] }
  0xf4   : > { %1973 = vmatpush3.bf16.msra.mxu1 %v1970_v5  ;;  %v535_v16 = vld [vmem:[%s2828_s27] sm:$0xff]  ;;  %v718_v30 = vld [vmem:[#allocation11 + $0x8] sm:$0xff]  ;;  %v538_v34 = vld [vmem:[%s2842_s12] sm:$0xff]  ;;  %s2473_s17 = smov 24   ;;  %s1813_s6 = sshll.u32 %s2556_s21, 7 }
  0xf5   : > { %1975 = vmatprep.subr.bf16.mxu1 %v1974_v8  ;;  %1966 = vmatpush3.bf16.msra.mxu0 %v1965_v12  ;;  %v719_v31 = vld [vmem:[#allocation11 + $0x10] sm:$0xff]  ;;  %v1978_v32 = vpack.c.bf16 %v718_v30, %v717_v29  ;;  %v720_v33 = vld [vmem:[#allocation11 + $0x18] sm:$0xff]  ;;  %v1791_v48 = vld [vmem:[#allocation13] ss:$0 sm:$0xff]  ;;  %s534_s24 = scalar_lea.vmem [#allocation14], %s1778_s30  ;;  %s2474_s30 = smov [#allocation14]  }
  0xf6   : > { %1967 = vmatprep.subr.bf16.mxu0 %v2465_v0  ;;  %v1788_v17 = vld [vmem:[%s3101_s7] ss:$0 sm:$0xff]  ;;  %v1982_v35 = vpack.c.bf16 %v720_v33, %v719_v31  ;;  %v539_v36 = vld [vmem:[%s2842_s12 + $0x8] sm:$0xff]  ;;  %s3106_s12 = sld [smem:[#allocation24_spill]]  ;;  %s3107_s7 = sld [smem:[#allocation32_spill]] }
  0xf7   : > { %v1786_v25 = vld [vmem:[%s3104_s22] ss:$0 sm:$0xff]  ;;  %s1611_s22 = sshll.u32 %s534_s24, 4  ;;  %s2380_s13 = sshll.u32 %s2474_s30, 4  ;;  %s2981_s22 = int_to_ptr.vmem [resolvable:$true] %s1611_s22  ;;  %s2381_s13 = int_to_ptr.vmem [resolvable:$false] %s2380_s13 }
  0xf8   : > { %1977 = vmatpush3.bf16.msra.mxu1 %v1974_v8  ;;  %s2376_s21 = scalar_lea.vmem %s2981_s22, 128  ;;  %s2382_s3 = scalar_lea.vmem %s2381_s13, 256 }
  0xf9   : > { %1969 = vmatpush3.bf16.msra.mxu0 %v1968_v14  ;;  %1986 = vmatprep.subr.bf16.mxu1 %v2465_v0  ;;  %p2377_p5 = scmp.ne.s32.totalorder %s2981_s22, %s2376_s21  ;;  %p2383_p11 = scmp.lt.s32.totalorder %s2981_s22, %s2381_s13 }
  0xfa   : > { %1979 = vmatprep.subr.bf16.mxu0 %v1978_v32  ;;  %p2384_p7 = scmp.lt.s32.totalorder %s2382_s3, %s2376_s21 }
  0xfb   : > { %1884 = vmatmul.mubr.msk.f32.vlgmr.msra.gmra.mrb[0].mxu1 %vm551_vm1, %v537_v15 }
  0xfc   : > { %1873 = vmatmul.mubr.msk.f32.vlgmr.msra.gmra.mrb[0].mxu0 %vm551_vm1, %v535_v16  ;;  %1901 = vmatprep.mubr.msk.f32.mxu1 %vm2466_vm0, %v2467_v1  ;;  %p3109_p2 = scmp.ne.s32.totalorder %s3106_s12, 0  ;;  %p2385_p9 = por %p2384_p7, %p2383_p11 }
  0xfd   : > { %1894 = vmatprep.mubr.msk.f32.mxu0 %vm551_vm1, %v538_v34  ;;  %1981 = vmatpush3.bf16.msra.mxu0 %v1978_v32 }
  0xfe   : > { %1983 = vmatprep.subr.bf16.mxu0 %v1982_v35  ;;  %p2378_p0 = pnand %p2377_p5, %p3109_p2 }
 0x100   : > { %p2379_p4 = pneg %p2378_p0 }
 0x101   : > { %1985 = vmatpush3.bf16.msra.mxu0 %v1982_v35 }
 0x102   : > { %1997 = vmatprep.subr.bf16.mxu0 %v2465_v0  ;;  %p2386_p12 = pnand %p2385_p9, %p2379_p4 }
 0x104   : > { %1895 = vmatmul.mubr.msk.f32.vlgmr.msra.gmra.mrb[2].mxu0 %vm551_vm1, %v539_v36 }
 0x105   : > { %1922 = vmatprep.mubr.msk.f32.mxu0 %vm2466_vm0, %v2467_v1 }
 0x1ce   : > { %v1885_v18 = vpop.f32.mrb[0].mxu1 }
 0x1cf   : > { %v714_v19 = vadd.f32 %v1885_v18, %v1788_v17  ;;  %v708_v20 = vpop.f32.mrb[1].mxu1  ;;  %v621_v21 = vpop.f32.mrb[0].mxu0 }
 0x1d0   : > { %v709_v22 = vadd.f32 %v1788_v17, %v708_v20  ;;  %v1874_v23 = vpop.f32.mrb[1].mxu0  ;;  %v2883_v28 = vadd.f32 %v1786_v25, %v621_v21 }
 0x1d2   : > { %v1987_v26 = vpack.c.bf16 %v714_v19, %v709_v22  ;;  %v2877_v27 = vpack.i.bf16 %v714_v19, %v709_v22 }
 0x1d4   : > { %2129 = vrot.lane.b32.xlu1 %v2877_v27, %s2468_s14  ;;  %1989 = vmatpush3.bf16.xpose.msk.msra.mxu1 %vm2870_vm3, %v1987_v26 }
 0x1d5   : > { %1990 = vmatprep.subr.bf16.mxu1 %v2465_v0 }
 0x1d7   : > { %v1896_v41 = vpop.f32.mrb[2].mxu0 }
 0x1d8   : > { %975 = vrot.lane.b32.xlu1 %v2883_v28, %s2468_s14  ;;  %v800_v42 = vpop.f32.mrb[3].mxu0  ;;  %v806_v49 = vadd.f32 %v1896_v41, %v1791_v48 }
 0x1d9   : > { %v801_v50 = vadd.f32 %v1791_v48, %v800_v42 }
 0x1db   : > { %1902 = vmatmul.mubr.msk.f32.vlgmr.msra.gmra.mrb[2].mxu1 %vm809_vm2, %v2883_v28  ;;  %v1991_v51 = vpack.c.bf16 %v806_v49, %v801_v50  ;;  %v2901_v52 = vpack.i.bf16 %v806_v49, %v801_v50 }
 0x1dc   : > { %1908 = vmatprep.mubr.msk.f32.mxu1 %vm2466_vm0, %v2467_v1 }
 0x1dd   : > { %1992 = vmatpush3.bf16.msra.mxu1 %v1991_v51 }
 0x1de   : > { %1993 = vmatprep.subr.bf16.mxu1 %v2465_v0 }
 0x246   : > { %v2130_v54 = vpop.permute.xlu1 %2129 }
 0x247   : > { %v2132_v55 = vunpack.i.h.bf16 %v2130_v54  ;;  %v2131_v56 = vunpack.i.l.bf16 %v2130_v54 }
 0x249   : > { %v1994_v59 = vpack.c.bf16 %v2132_v55, %v2131_v56 }
 0x24a   : > { %v976_v60 = vpop.permute.xlu1 %975 }
 0x2ae   : > { %v885_v37 = vpop.f32.mrb[2].mxu1 }
 0x2af   : > { %v889_v38 = vmul.f32 0.35355338, %v885_v37  ;;  %v1903_v39 = vpop.f32.mrb[3].mxu1 }
 0x2b1   : > { %v891_v40 = vsel %vm890_vm4, %v889_v38, -inf }
 0x2b2   : > { %892 = vmax.xlane.f32.xlu0 %v891_v40 }
 0x33f   : > { %v893_v43 = vpop.xlane.xlu0 %892 }
 0x340   : > { %v894_v44 = vsub.f32 %v889_v38, %v893_v43 }
 0x342   : > { %v895_v45 = vmul.f32 1.442695, %v894_v44 }
 0x344   : > { %2158 = vpow2.f32 %v895_v45 }
 0x34e   : > { %v2159_v46 = vpop.eup %2158 }
 0x34f   : > { %v897_v47 = vsel %vm890_vm4, %v2159_v46, 0.0 }
 0x350   : > { %898 = vadd.xlane.f32.xlu0 %v897_v47 }
 0x3dd   : > { %v899_v53 = vpop.xlane.xlu0 %898 }
 0x3de   : > { %2160 = vrcp.f32 %v899_v53 }
 0x3e8   : > { %v2161_v57 = vpop.eup %2160 }
 0x3e9   : > { %v901_v58 = vmul.f32 %v2161_v57, %v2159_v46 }
 0x3eb   : > { %1909 = vmatmul.mubr.msk.f32.vlgmr.msra.gmra.mrb[4].mxu1 %vm890_vm4, %v901_v58 }
 0x3ec   : > { %1996 = vmatpush3.bf16.xpose.msk.msra.mxu1 %vm2870_vm3, %v1994_v59  ;;  %1915 = vmatprep.mubr.msk.f32.mxu1 %vm2466_vm0, %v2467_v1 }
 0x3ed   : > { %2004 = vmatprep.subr.bf16.mxu1 %v2465_v0 }
 0x3f3   : > { %1916 = vmatmul.mubr.msk.f32.vlgmr.msra.gmra.mrb[6].mxu1 %vm809_vm2, %v976_v60 }
 0x3f4   : > { %1936 = vmatprep.mubr.msk.f32.mxu1 %vm2466_vm0, %v2467_v1 }
 0x4be   : > { %v2913_v61 = vpop.f32.mrb[4].mxu1 }
 0x4bf   : > { %v1910_v62 = vpop.f32.mrb[5].mxu1 }
 0x4c6   : > { %v1053_v63 = vpop.f32.mrb[6].mxu1 }
 0x4c7   : > { %v1057_v2 = vmul.f32 0.35355338, %v1053_v63  ;;  %v1917_v3 = vpop.f32.mrb[7].mxu1 }
 0x4c8   : > { %v1513_v3 = vld [vmem:[%s3105_s28 + $0x8] sm:$0xff] }
 0x4c9   : > { %v1058_v4 = vsel %vm890_vm4, %v1057_v2, -inf }
 0x4ca   : > { %1059 = vmax.xlane.f32.xlu0 %v1058_v4  ;;  %v1514_v4 = vld [vmem:[%s3105_s28 + $0x10] sm:$0xff] }
 0x4e0   : > { %2134 = vrot.lane.b32.xlu0 %v2901_v52, %s2468_s14 }
 0x4e4   : > { %2139 = vrot.lane.b32.xlu0 %v2877_v27, %s2469_s1 }
 0x4e8   : > { %1150 = vrot.lane.b32.xlu0 %v2883_v28, %s2469_s1 }
 0x557   : > { %v1060_v5 = vpop.xlane.xlu0 %1059 }
 0x558   : > { %v1061_v6 = vsub.f32 %v1057_v2, %v1060_v5  ;;  %v1512_v2 = vld [vmem:[%s3105_s28] sm:$0xff] }
 0x559   : > { %v2015_v5 = vpack.c.bf16 %v1513_v3, %v1512_v2 }
 0x55a   : > { %v1062_v7 = vmul.f32 1.442695, %v1061_v6  ;;  %v1515_v6 = vld [vmem:[%s3105_s28 + $0x18] sm:$0xff] }
 0x55b   : > { %v2135_v8 = vpop.permute.xlu0 %2134 }
 0x55c   : > { %2162 = vpow2.f32 %v1062_v7  ;;  %v2137_v9 = vunpack.i.h.bf16 %v2135_v8  ;;  %v2136_v10 = vunpack.i.l.bf16 %v2135_v8  ;;  %v2018_v7 = vpack.c.bf16 %v1515_v6, %v1514_v4 }
 0x55e   : > { %v1998_v11 = vpack.c.bf16 %v2137_v9, %v2136_v10 }
 0x55f   : > { %v2140_v18 = vpop.permute.xlu0 %2139 }
 0x560   : > { %1999 = vmatpush3.bf16.msra.mxu0 %v1998_v11  ;;  %v2142_v20 = vunpack.i.h.bf16 %v2140_v18  ;;  %v2141_v21 = vunpack.i.l.bf16 %v2140_v18 }
 0x561   : > { %2000 = vmatprep.subr.bf16.mxu0 %v2465_v0 }
 0x562   : > { %v2001_v25 = vpack.c.bf16 %v2142_v20, %v2141_v21 }
 0x563   : > { %v1151_v26 = vpop.permute.xlu0 %1150 }
 0x566   : > { %v2163_v12 = vpop.eup %2162 }
 0x567   : > { %v1064_v13 = vsel %vm890_vm4, %v2163_v12, 0.0 }
 0x568   : > { %1065 = vadd.xlane.f32.xlu1 %v1064_v13 }
 0x579   : > { %2144 = vrot.lane.b32.xlu1 %v2901_v52, %s2469_s1 }
 0x57d   : > { %2149 = vrot.lane.b32.xlu1 %v2877_v27, %s2470_s16 }
 0x5f5   : > { %v1066_v14 = vpop.xlane.xlu1 %1065 }
 0x5f6   : > { %2164 = vrcp.f32 %v1066_v14 }
 0x5f9   : > { %v2145_v15 = vpop.permute.xlu1 %2144 }
 0x5fa   : > { %v2147_v16 = vunpack.i.h.bf16 %v2145_v15  ;;  %v2146_v17 = vunpack.i.l.bf16 %v2145_v15 }
 0x5fc   : > { %v2005_v19 = vpack.c.bf16 %v2147_v16, %v2146_v17 }
 0x5fd   : > { %v2150_v39 = vpop.permute.xlu1 %2149 }
 0x5fe   : > { %2006 = vmatpush3.bf16.msra.mxu1 %v2005_v19  ;;  %v2152_v41 = vunpack.i.h.bf16 %v2150_v39  ;;  %v2151_v42 = vunpack.i.l.bf16 %v2150_v39 }
 0x5ff   : > { %2007 = vmatprep.subr.bf16.mxu1 %v2465_v0 }
 0x600   : > { %v2165_v22 = vpop.eup %2164  ;;  %v2008_v45 = vpack.c.bf16 %v2152_v41, %v2151_v42 }
 0x601   : > { %v1068_v23 = vmul.f32 %v2165_v22, %v2163_v12 }
 0x603   : > { %1923 = vmatmul.mubr.msk.f32.vlgmr.msra.gmra.mrb[4].mxu0 %vm890_vm4, %v1068_v23 }
 0x604   : > { %2003 = vmatpush3.bf16.xpose.msk.msra.mxu0 %vm2870_vm3, %v2001_v25  ;;  %1929 = vmatprep.mubr.msk.f32.mxu0 %vm2466_vm0, %v2467_v1 }
 0x605   : > { %2011 = vmatprep.subr.bf16.mxu0 %v2465_v0 }
 0x60b   : > { %1930 = vmatmul.mubr.msk.f32.vlgmr.msra.gmra.mrb[6].mxu0 %vm809_vm2, %v1151_v26 }
 0x60c   : > { %1950 = vmatprep.mubr.msk.f32.mxu0 %vm2466_vm0, %v2467_v1 }
 0x6d6   : > { %v1146_v27 = vpop.f32.mrb[4].mxu0 }
 0x6d7   : > { %v1924_v29 = vpop.f32.mrb[5].mxu0 }
 0x6de   : > { %v1228_v30 = vpop.f32.mrb[6].mxu0 }
 0x6df   : > { %v1232_v31 = vmul.f32 0.35355338, %v1228_v30  ;;  %v1931_v32 = vpop.f32.mrb[7].mxu0 }
 0x6e1   : > { %v1233_v33 = vsel %vm890_vm4, %v1232_v31, -inf }
 0x6e2   : > { %1234 = vmax.xlane.f32.xlu0 %v1233_v33 }
 0x76f   : > { %v1235_v34 = vpop.xlane.xlu0 %1234 }
 0x770   : > { %v1236_v35 = vsub.f32 %v1232_v31, %v1235_v34 }
 0x772   : > { %v1237_v36 = vmul.f32 1.442695, %v1236_v35 }
 0x774   : > { %2166 = vpow2.f32 %v1237_v36 }
 0x77e   : > { %v2167_v37 = vpop.eup %2166 }
 0x77f   : > { %v1239_v38 = vsel %vm890_vm4, %v2167_v37, 0.0 }
 0x780   : > { %1240 = vadd.xlane.f32.xlu1 %v1239_v38 }
 0x791   : > { %1323 = vrot.lane.b32.xlu1 %v2883_v28, %s2470_s16 }
 0x80d   : > { %v1241_v40 = vpop.xlane.xlu1 %1240 }
 0x80e   : > { %2168 = vrcp.f32 %v1241_v40 }
 0x811   : > { %v1324_v46 = vpop.permute.xlu1 %1323 }
 0x818   : > { %v2169_v43 = vpop.eup %2168 }
 0x819   : > { %v1243_v44 = vmul.f32 %v2169_v43, %v2167_v37 }
 0x81b   : > { %1937 = vmatmul.mubr.msk.f32.vlgmr.msra.gmra.mrb[8].mxu1 %vm890_vm4, %v1243_v44 }
 0x81c   : > { %2010 = vmatpush3.bf16.xpose.msk.msra.mxu1 %vm2870_vm3, %v2008_v45  ;;  %1943 = vmatprep.mubr.msk.f32.mxu1 %vm2466_vm0, %v2467_v1 }
 0x823   : > { %1944 = vmatmul.mubr.msk.f32.vlgmr.msra.gmra.mrb[10].mxu1 %vm809_vm2, %v1324_v46 }
 0x8ee   : > { %v1319_v28 = vpop.f32.mrb[8].mxu1 }
 0x8ef   : > { %v1938_v47 = vpop.f32.mrb[9].mxu1 }
 0x8f6   : > { %v1401_v48 = vpop.f32.mrb[10].mxu1 }
 0x8f7   : > { %v1405_v49 = vmul.f32 0.35355338, %v1401_v48  ;;  %v1945_v50 = vpop.f32.mrb[11].mxu1 }
 0x8f9   : > { %v1406_v51 = vsel %vm890_vm4, %v1405_v49, -inf }
 0x8fa   : > { %1407 = vmax.xlane.f32.xlu0 %v1406_v51 }
 0x910   : > { %2154 = vrot.lane.b32.xlu0 %v2901_v52, %s2470_s16  ;;  %s3108_s16 = sld [smem:[#allocation33_spill]] }
 0x914   : > { %1497 = vrot.lane.b32.xlu0 %v1146_v27, %s2471_s15 }
 0x916   : > { %s2979_s15 = scalar_lea.hbm %s3108_s16, %s1813_s6 }
 0x918   : > { %1501 = vrot.lane.b32.xlu0 %v1319_v28, %s2472_s4  ;;  %s1598_s4 = scalar_lea.sflag [#allocation4], %s2822_s11 }
 0x987   : > { %v1408_v24 = vpop.xlane.xlu0 %1407 }
 0x988   : > { %v1409_v53 = vsub.f32 %v1405_v49, %v1408_v24 }
 0x98a   : > { %v1410_v54 = vmul.f32 1.442695, %v1409_v53 }
 0x98b   : > { %v2155_v55 = vpop.permute.xlu0 %2154 }
 0x98c   : > { %2170 = vpow2.f32 %v1410_v54  ;;  %v2157_v56 = vunpack.i.h.bf16 %v2155_v55  ;;  %v2156_v57 = vunpack.i.l.bf16 %v2155_v55 }
 0x98e   : > { %v2012_v58 = vpack.c.bf16 %v2157_v56, %v2156_v57 }
 0x98f   : > { %v1498_v9 = vpop.permute.xlu0 %1497 }
 0x990   : > { %2013 = vmatpush3.bf16.msra.mxu0 %v2012_v58  ;;  %v1508_v11 = vsel %vm809_vm2, %v2913_v61, %v1498_v9 }
 0x991   : > { %2014 = vmatprep.subr.bf16.mxu0 %v2465_v0 }
 0x993   : > { %v1502_v10 = vpop.permute.xlu0 %1501 }
 0x994   : > { %v1509_v12 = vsel %vm890_vm4, %v1508_v11, %v1502_v10 }
 0x996   : > { %v2171_v59 = vpop.eup %2170 }
 0x997   : > { %v1412_v60 = vsel %vm890_vm4, %v2171_v59, 0.0 }
 0x998   : > { %1413 = vadd.xlane.f32.xlu1 %v1412_v60 }
 0xa25   : > { %v1414_v52 = vpop.xlane.xlu1 %1413 }
 0xa26   : > { %2172 = vrcp.f32 %v1414_v52 }
 0xa30   : > { %v2173_v62 = vpop.eup %2172 }
 0xa31   : > { %v1416_v63 = vmul.f32 %v2173_v62, %v2171_v59 }
 0xa33   : > { %1951 = vmatmul.mubr.msk.f32.vlgmr.msra.gmra.mrb[8].mxu0 %vm890_vm4, %v1416_v63 }
 0xa34   : > { %1961 = vmatprep.mubr.msk.f32.mxu0 %vm2466_vm0, %v2467_v1  ;;  %2016 = vmatpush3.bf16.msra.mxu0 %v2015_v5 }
 0xa35   : > { %2017 = vmatprep.subr.bf16.mxu0 %v2465_v0  ;;  %v1810_v0 = vld [vmem:[%s3107_s7] ss:$0 sm:$0xff] }
 0xa38   : > { %2019 = vmatpush3.bf16.msra.mxu0 %v2018_v7 }
 0xb06   : > { %v1492_v1 = vpop.f32.mrb[8].mxu0 }
 0xb07   : > { %1505 = vrot.lane.b32.xlu0 %v1492_v1, %s2473_s17  ;;  %v1952_v8 = vpop.f32.mrb[9].mxu0 }
 0xb79   : > { %v1506_v13 = vpop.permute.xlu0 %1505 }
 0xb7a   : > { %v1511_v14 = vsel %vm1510_vm5, %v1509_v12, %v1506_v13 }
 0xb7b   : > { %1962 = vmatmul.mubr.msk.f32.vlgmr.msra.gmra.mrb[10].mxu0 %vm551_vm1, %v1511_v14 }
 0xc4e   : > { %v1592_v15 = vpop.f32.mrb[10].mxu0 }
 0xc4f   : > { %v1593_v16 = vadd.f32 %v1810_v0, %v1592_v15  ;;  %v1963_v17 = vpop.f32.mrb[11].mxu0 }
 0xc51   : > { %1596 = vst.msk [vmem:[%s534_s24] sm:$0xff] %vm551_vm1, %v1593_v16 }
 0xc52   : > { %2389 = shalt.err (!%p2386_p12)
}
 0xc53   : > { %s2390_s11 = scalar_lea.hbm %s2979_s15, 128  ;;  %s2394_s27 = scalar_lea.hbm %s3108_s16, 256 }
 0xc54   : > { %p2391_p8 = scmp.ne.s32.totalorder %s2979_s15, %s2390_s11  ;;  %p2395_p1 = scmp.lt.u32.totalorder %s2979_s15, %s3108_s16 }
 0xc55   : > { %p2396_p6 = scmp.lt.u32.totalorder %s2394_s27, %s2390_s11  ;;  %p2398_p5 = scmp.lt.u32.totalorder %s2390_s11, %s2979_s15 }
 0xc56   : > { %p2392_p10 = pnand %p2391_p8, %p3109_p2 }
 0xc57   : > { %p2397_p3 = por %p2396_p6, %p2395_p1 }
 0xc58   : > { %p2393_p13 = pneg %p2392_p10 }
 0xc59   : > { %p2399_p0 = por %p2398_p5, %p2397_p3 }
 0xc5b   : > { %p2400_p4 = pnand %p2399_p0, %p2393_p13 }
 0xc5d   : > { %2403 = shalt.err (!%p2400_p4)
}
 0xc5e   : > { %2042 = dma.vmem_to_hbm [thread:$0]  (%p3109_p2), %s2981_s22, 128, %s2979_s15, %s1598_s4  }
 0xc5f PF: > { %s3110_s26 = sld [smem:[#allocation20_spill]]  ;;  %s3111_s17 = sld [smem:[#allocation22_spill]] }
 0xc60   : > { %p3113_p7 = scmp.ge.s32.totalorder %s2454_s20, 2 }
 0xc65   : > { %s1623_s23 = sand.u32 1, %s3110_s26   ;;  %p3112_p11 = scmp.ne.s32.totalorder %s3111_s17, 0 }
 0xc66   : > { %s1624_s10 = scalar_lea.sflag [#allocation4], %s1623_s23 }
 0xc67   : > { %p2068_p9 = pnand %p3113_p7, %p3112_p11 }
 0xc69   : > { %2437 = dma.done.wait (!%p2068_p9), %s1624_s10, 128  }
 0xc6a   : > { %2439 = vsyncadd (!%p2068_p9), %s1624_s10, 4294967168  ;;  %s3114_s20 = sld [smem:[#allocation23_spill]]  ;;  %s3115_s7 = sld [smem:[#allocation21_spill]] }
 0xc6b   : > { %s3116_s19 = sld [smem:[#allocation25_spill]]  ;;  %s3117_s17 = smov %s2446_s18 }
 0xc70   : > { %p29_p12 = scmp.ge.s32.totalorder %s3114_s20, 4   ;;  %s3118_s18 = smov %s3115_s7 }
 0xc72   :  { %31 = sbr.rel (!%p29_p12) target bundleno = 18 (0x12), region = 149 }
 0xc79   :  { %1629 = vsyncpa [#allocation3], 1 }
 0xc7a   :  { %1631 = vsyncpa [#allocation3 + $0x1], 1 }
 0xc7b   :  { %1632 = vsyncpa [#allocation6], 1 }
 0xc7c   :  { %1634 = vsyncpa [#allocation6 + $0x1], 1 }
 0xc7d   :  { %1635 = vsyncpa [#allocation9], 1 }
 0xc7e   :  { %1636 = vsyncpa [#allocation12], 1 }
 0xc7f   :  { %1637 = vsyncpa [#allocation4], 1 }
 0xc80   :  { %1639 = vsyncpa [#allocation4 + $0x1], 1 }

</bundles_post_ra>
